<compile_context>
chip_gen: v7x
topology: tpu7x:2x2x1
jax: 0.10.0
libtpu: 0.0.40
codegen_flags: <defaults>
</compile_context>

<pallas_src>
import jax
import jax.numpy as jnp
from jax.experimental import pallas as pl
from jax.experimental.pallas import tpu as pltpu

IN_DIM = 25
HID_DIM = 100
OUT_DIM = 25
PAD = 128          # lane-dense width used for weights / hidden / output
MAX_TB = 2048      # cap on the batch tile (f32; keeps VMEM use ~4 MiB)
MIN_SPLIT = 512    # for B >= 2*MIN_SPLIT force >=2 grid steps (v7x has 2 TCs)


def _round_up(n, m):
    return ((n + m - 1) // m) * m


def mlp_kernel(x_ref, w1_ref, b1_ref, w2_ref, b2_ref, o_ref, xpad_ref):
    # x_ref:    (TB, 25)   unpadded batch tile (minimal HBM read traffic)
    # w1_ref:   (128, 128) padded W1 (zeros outside [0:25, 0:100])
    # b1_ref:   (1, 128)   padded b1
    # w2_ref:   (128, 128) padded W2 (zeros outside [0:100, 0:25])
    # b2_ref:   (1, 128)   padded b2
    # o_ref:    (TB, 128)  lane-dense output tile (valid cols 0:25)
    # xpad_ref: (TB, 128)  VMEM scratch: x zero-padded to 128 lanes so both
    #                      contractions are MXU-aligned (K=128).  Fully
    #                      rewritten each step -> no cross-step / cross-core
    #                      state dependence.
    xpad_ref[...] = jnp.zeros_like(xpad_ref)
    xpad_ref[:, :IN_DIM] = x_ref[...]

    h = jnp.dot(xpad_ref[...], w1_ref[...], preferred_element_type=jnp.float32)
    h = h + b1_ref[...]                 # (TB, 128) + (1, 128)
    h = jnp.maximum(h, 0.0)             # ReLU; padded hidden lanes stay exactly 0
    y = jnp.dot(h, w2_ref[...], preferred_element_type=jnp.float32)
    y = y + b2_ref[...]                 # (TB, 128) + (1, 128)
    o_ref[...] = y.astype(o_ref.dtype)


def prepare_params(w1, b1, w2, b2):
    """Pad params to the lane-dense 128-wide kernel layout ONCE (init time)."""
    w1p = jnp.zeros((PAD, PAD), jnp.float32).at[:IN_DIM, :HID_DIM].set(w1)
    b1p = jnp.zeros((1, PAD), jnp.float32).at[:, :HID_DIM].set(b1)
    w2p = jnp.zeros((PAD, PAD), jnp.float32).at[:HID_DIM, :OUT_DIM].set(w2)
    b2p = jnp.zeros((1, PAD), jnp.float32).at[:, :OUT_DIM].set(b2)
    return w1p, b1p, w2p, b2p


@jax.jit
def net_forward(x, w1p, b1p, w2p, b2p):
    """x: (B, 25) f32 -> (B, 25) f32.  Params must come from prepare_params()."""
    B = x.shape[0]

    # Balanced batch tiling: minimal padding waste; >=2 steps for large B so
    # both v7x TensorCores get work via dimension_semantics=("parallel",).
    n_tiles = -(-B // MAX_TB)                 # ceil div
    if n_tiles == 1 and B >= 2 * MIN_SPLIT:
        n_tiles = 2
    tb = _round_up(-(-B // n_tiles), 8)       # multiple of 8 sublanes
    Bp = n_tiles * tb
    if Bp != B:
        x = jnp.pad(x, ((0, Bp - B), (0, 0)))

    out_padded = pl.pallas_call(
        mlp_kernel,
        out_shape=jax.ShapeDtypeStruct((Bp, PAD), jnp.float32),
        grid=(n_tiles,),
        in_specs=[
            pl.BlockSpec((tb, IN_DIM), lambda i: (i, 0)),   # x tile, unpadded lanes
            pl.BlockSpec((PAD, PAD), lambda i: (0, 0)),     # W1 (constant index -> staged once)
            pl.BlockSpec((1, PAD), lambda i: (0, 0)),       # b1
            pl.BlockSpec((PAD, PAD), lambda i: (0, 0)),     # W2
            pl.BlockSpec((1, PAD), lambda i: (0, 0)),       # b2
        ],
        out_specs=pl.BlockSpec((tb, PAD), lambda i: (i, 0)),
        scratch_shapes=[pltpu.VMEM((tb, PAD), jnp.float32)],
        compiler_params=pltpu.CompilerParams(
            dimension_semantics=("parallel",)),  # shard batch steps across TCs
    )(x, w1p, b1p, w2p, b2p)

    # Slice back to the logical (B, 25) output (fused inside the jit).
    return out_padded[:B, :OUT_DIM]


def init_params(key):
    """Deterministic init mirroring nn.Linear default (uniform +/- 1/sqrt(fan_in))."""
    k1, k2, k3, k4 = jax.random.split(key, 4)
    bound1 = 1.0 / jnp.sqrt(IN_DIM)
    bound2 = 1.0 / jnp.sqrt(HID_DIM)
    # Stored as (in, out) so the kernel does x @ W (== PyTorch x @ weight.T).
    w1 = jax.random.uniform(k1, (IN_DIM, HID_DIM), jnp.float32, -bound1, bound1)
    b1 = jax.random.uniform(k2, (1, HID_DIM), jnp.float32, -bound1, bound1)
    w2 = jax.random.uniform(k3, (HID_DIM, OUT_DIM), jnp.float32, -bound2, bound2)
    b2 = jax.random.uniform(k4, (1, OUT_DIM), jnp.float32, -bound2, bound2)
    return w1, b1, w2, b2


if __name__ == "__main__":
    key = jax.random.PRNGKey(0)
    kp, kx = jax.random.split(key)
    w1, b1, w2, b2 = init_params(kp)
    # Pad weights/biases ONCE, outside the per-call hot path.
    w1p, b1p, w2p, b2p = prepare_params(w1, b1, w2, b2)

    batch = 64
    # The PyTorch forward takes a dict {'input': tensor}; mirror that glue here.
    batch_dict = {"input": jax.random.uniform(kx, (batch, IN_DIM), jnp.float32)}
    x = batch_dict["input"]

    out = net_forward(x, w1p, b1p, w2p, b2p)
    out = jax.block_until_ready(out)

    # Reference check in plain JAX (unpadded math).
    ref = jnp.maximum(x @ w1 + b1, 0.0) @ w2 + b2
    assert out.shape == (batch, OUT_DIM)
    assert jnp.allclose(out, ref, atol=1e-5, rtol=1e-5), "mismatch vs reference"

    print("KERNEL_OK")
</pallas_src>

<mosaic_0001>
module attributes {stable_mosaic.version = 11 : i64} {
  func.func @mlp_kernel(%arg0: i32, %arg1: memref<64x25xf32, #tpu.memory_space<vmem>>, %arg2: memref<128x128xf32, #tpu.memory_space<vmem>>, %arg3: memref<1x128xf32, #tpu.memory_space<vmem>>, %arg4: memref<128x128xf32, #tpu.memory_space<vmem>>, %arg5: memref<1x128xf32, #tpu.memory_space<vmem>>, %arg6: memref<64x128xf32, #tpu.memory_space<vmem>>, %arg7: memref<64x128xf32, #tpu.memory_space<vmem>>) attributes {dimension_semantics = [#tpu.dimension_semantics<parallel>], iteration_bounds = array<i64: 1>, scalar_prefetch = 0 : i64, scratch_operands = 1 : i64, tpu.core_type = #tpu.core_type<tc>, window_params = [{transform_indices = @transform_0, window_bounds = array<i64: 64, 25>}, {pipeline_mode = #tpu.pipeline_mode<synchronous>, transform_indices = @transform_1, window_bounds = array<i64: 128, 128>}, {pipeline_mode = #tpu.pipeline_mode<synchronous>, transform_indices = @transform_2, window_bounds = array<i64: 1, 128>}, {pipeline_mode = #tpu.pipeline_mode<synchronous>, transform_indices = @transform_3, window_bounds = array<i64: 128, 128>}, {pipeline_mode = #tpu.pipeline_mode<synchronous>, transform_indices = @transform_4, window_bounds = array<i64: 1, 128>}, {transform_indices = @transform_5, window_bounds = array<i64: 64, 128>}]} {
    %cst = arith.constant 0.000000e+00 : f32
    %0 = vector.broadcast %cst : f32 to vector<64x128xf32>
    %c0 = arith.constant 0 : index
    %c0_0 = arith.constant 0 : index
    %1 = vector.load %arg7[%c0, %c0_0] : memref<64x128xf32, #tpu.memory_space<vmem>>, vector<64x128xf32>
    tpu.vector_store %arg7[%c0, %c0_0], %0 {strides = array<i32>} : memref<64x128xf32, #tpu.memory_space<vmem>>, vector<64x128xf32>,
    %c0_1 = arith.constant 0 : index
    %c0_2 = arith.constant 0 : index
    %2 = vector.load %arg1[%c0_1, %c0_2] : memref<64x25xf32, #tpu.memory_space<vmem>>, vector<64x25xf32>
    %c0_3 = arith.constant 0 : index
    %c0_4 = arith.constant 0 : index
    %3 = vector.load %arg7[%c0_3, %c0_4] : memref<64x128xf32, #tpu.memory_space<vmem>>, vector<64x25xf32>
    tpu.vector_store %arg7[%c0_3, %c0_4], %2 {strides = array<i32>} : memref<64x128xf32, #tpu.memory_space<vmem>>, vector<64x25xf32>,
    %c0_5 = arith.constant 0 : index
    %c0_6 = arith.constant 0 : index
    %4 = vector.load %arg7[%c0_5, %c0_6] : memref<64x128xf32, #tpu.memory_space<vmem>>, vector<64x128xf32>
    %c0_7 = arith.constant 0 : index
    %c0_8 = arith.constant 0 : index
    %5 = vector.load %arg2[%c0_7, %c0_8] : memref<128x128xf32, #tpu.memory_space<vmem>>, vector<128x128xf32>
    %cst_9 = arith.constant dense<0.000000e+00> : vector<64x128xf32>
    %6 = tpu.matmul %4, %5, %cst_9 {dimension_numbers = #tpu.dot_dimension_numbers<[1], [0], [0], [1], [0, 0, 1, 1], [], []>} : vector<64x128xf32>, vector<128x128xf32>, vector<64x128xf32> -> vector<64x128xf32>
    %c0_10 = arith.constant 0 : index
    %c0_11 = arith.constant 0 : index
    %7 = vector.load %arg3[%c0_10, %c0_11] : memref<1x128xf32, #tpu.memory_space<vmem>>, vector<1x128xf32>
    %8 = vector.broadcast %7 : vector<1x128xf32> to vector<64x128xf32>
    %9 = arith.addf %6, %8 : vector<64x128xf32>
    %cst_12 = arith.constant 0.000000e+00 : f32
    %10 = vector.broadcast %cst_12 : f32 to vector<64x128xf32>
    %11 = arith.maximumf %9, %10 : vector<64x128xf32>
    %c0_13 = arith.constant 0 : index
    %c0_14 = arith.constant 0 : index
    %12 = vector.load %arg4[%c0_13, %c0_14] : memref<128x128xf32, #tpu.memory_space<vmem>>, vector<128x128xf32>
    %cst_15 = arith.constant dense<0.000000e+00> : vector<64x128xf32>
    %13 = tpu.matmul %11, %12, %cst_15 {dimension_numbers = #tpu.dot_dimension_numbers<[1], [0], [0], [1], [0, 0, 1, 1], [], []>} : vector<64x128xf32>, vector<128x128xf32>, vector<64x128xf32> -> vector<64x128xf32>
    %c0_16 = arith.constant 0 : index
    %c0_17 = arith.constant 0 : index
    %14 = vector.load %arg5[%c0_16, %c0_17] : memref<1x128xf32, #tpu.memory_space<vmem>>, vector<1x128xf32>
    %15 = vector.broadcast %14 : vector<1x128xf32> to vector<64x128xf32>
    %16 = arith.addf %13, %15 : vector<64x128xf32>
    %c0_18 = arith.constant 0 : index
    %c0_19 = arith.constant 0 : index
    %17 = vector.load %arg6[%c0_18, %c0_19] : memref<64x128xf32, #tpu.memory_space<vmem>>, vector<64x128xf32>
    tpu.vector_store %arg6[%c0_18, %c0_19], %16 {strides = array<i32>} : memref<64x128xf32, #tpu.memory_space<vmem>>, vector<64x128xf32>,
    return
  }
  func.func @transform_0(%arg0: i32) -> (i32, i32) {
    %c0_i32 = arith.constant 0 : i32
    %c0_i32_0 = arith.constant 0 : i32
    return %arg0, %c0_i32 : i32, i32
  }
  func.func @transform_1(%arg0: i32) -> (i32, i32) {
    %c0_i32 = arith.constant 0 : i32
    %c0_i32_0 = arith.constant 0 : i32
    %c0_i32_1 = arith.constant 0 : i32
    return %c0_i32, %c0_i32_0 : i32, i32
  }
  func.func @transform_2(%arg0: i32) -> (i32, i32) {
    %c0_i32 = arith.constant 0 : i32
    %c0_i32_0 = arith.constant 0 : i32
    %c0_i32_1 = arith.constant 0 : i32
    return %c0_i32, %c0_i32_0 : i32, i32
  }
  func.func @transform_3(%arg0: i32) -> (i32, i32) {
    %c0_i32 = arith.constant 0 : i32
    %c0_i32_0 = arith.constant 0 : i32
    %c0_i32_1 = arith.constant 0 : i32
    return %c0_i32, %c0_i32_0 : i32, i32
  }
  func.func @transform_4(%arg0: i32) -> (i32, i32) {
    %c0_i32 = arith.constant 0 : i32
    %c0_i32_0 = arith.constant 0 : i32
    %c0_i32_1 = arith.constant 0 : i32
    return %c0_i32, %c0_i32_0 : i32, i32
  }
  func.func @transform_5(%arg0: i32) -> (i32, i32) {
    %c0_i32 = arith.constant 0 : i32
    %c0_i32_0 = arith.constant 0 : i32
    return %arg0, %c0_i32 : i32, i32
  }
}

</mosaic_0001>

<bundles_post_ra>
// kernel: net_forward.1
= control target key start
LH: loop header
LB: loop body
LE: loop exit
PB: predicated region body
PF: predicated region fallthrough
CT: control target
= control target key end

     0   :  { %10 = vsyncpa [#allocation4], 0  ;;  %s735_s0 = inlined_call_operand.vmem [shape: f32[64,25], index: 0, kind: input, shape index: {}]   ;;  %s736_s1 = inlined_call_operand.hbm [shape: f32[128,128], index: 1, kind: input, shape index: {}]   ;;  %s737_s2 = inlined_call_operand.vmem [shape: f32[1,128], index: 2, kind: input, shape index: {}]   ;;  %s738_s3 = inlined_call_operand.hbm [shape: f32[128,128], index: 3, kind: input, shape index: {}]   ;;  %s739_s4 = inlined_call_operand.vmem [shape: f32[1,128], index: 4, kind: input, shape index: {}]   ;;  %s740_s5 = inlined_call_operand.vmem [shape: f32[64,128], index: 5, kind: output, shape index: {}]  }
   0x1   :  { %11 = vsyncpa [#allocation6], 0  ;;  %s614_s18 = smov [#allocation3]   ;;  %s566_s22 = scalar_lea.hbm %s736_s1, 2048 }
   0x2   :  { %s19_s19 = sshll.u32 %s614_s18, 4  ;;  %p567_p0 = scmp.ne.s32.totalorder %s736_s1, %s566_s22  ;;  %s20_s19 = int_to_ptr.vmem [resolvable:$true] %s19_s19 }
   0x3   :  { %p570_p1 = scmp.lt.u32.totalorder %s566_s22, %s736_s1 }
   0x5   :  { %p572_p2 = pnand %p570_p1, %p567_p0 }
   0x7   :  { %575 = shalt.err (!%p572_p2)
}
   0x8   :  { %s576_s27 = scalar_lea.vmem %s20_s19, 2048  ;;  %p581_p4 = scmp.lt.s32.totalorder %s20_s19, %s20_s19 }
   0x9   :  { %p577_p3 = scmp.ne.s32.totalorder %s20_s19, %s576_s27  ;;  %p582_p5 = scmp.lt.s32.totalorder %s576_s27, %s576_s27 }
   0xb   :  { %p583_p6 = por %p582_p5, %p581_p4 }
   0xd   :  { %p584_p7 = pnand %p583_p6, %p577_p3 }
   0xf   :  { %587 = shalt.err (!%p584_p7)
}
  0x10   :  { %s615_s28 = smov 128   ;;  %s616_s29 = smov 8  }
  0x11   :  { %25 = dma.hbm_to_vmem [thread:$0]  %s736_s1, 2048, %s20_s19, [#allocation4], %s615_s28, %s615_s28, %s616_s29  }
  0x12   :  { %s617_s7 = smov [#allocation5]   ;;  %s588_s11 = scalar_lea.hbm %s738_s3, 2048 }
  0x13   :  { %s33_s8 = sshll.u32 %s617_s7, 4  ;;  %p589_p8 = scmp.ne.s32.totalorder %s738_s3, %s588_s11  ;;  %s34_s8 = int_to_ptr.vmem [resolvable:$true] %s33_s8 }
  0x14   :  { %p592_p9 = scmp.lt.u32.totalorder %s588_s11, %s738_s3 }
  0x16   :  { %p594_p10 = pnand %p592_p9, %p589_p8 }
  0x18   :  { %597 = shalt.err (!%p594_p10)
}
  0x19   :  { %s598_s16 = scalar_lea.vmem %s34_s8, 2048  ;;  %p603_p12 = scmp.lt.s32.totalorder %s34_s8, %s34_s8 }
  0x1a   :  { %p599_p11 = scmp.ne.s32.totalorder %s34_s8, %s598_s16  ;;  %p604_p13 = scmp.lt.s32.totalorder %s598_s16, %s598_s16 }
  0x1c   :  { %p605_p0 = por %p604_p13, %p603_p12 }
  0x1e   :  { %p606_p1 = pnand %p605_p0, %p599_p11 }
  0x20   :  { %609 = shalt.err (!%p606_p1)
}
  0x21   :  { %39 = dma.hbm_to_vmem [thread:$0]  %s738_s3, 2048, %s34_s8, [#allocation6], %s615_s28, %s615_s28, %s616_s29  }
  0x22   :  { %610 = dma.done.wait [#allocation4], 2048  }
  0x23   :  { %611 = vsyncadd [#allocation4], 4294965248 }
  0x24   :  { %612 = dma.done.wait [#allocation6], 2048  }
  0x25   :  { %613 = vsyncadd [#allocation6], 4294965248  ;;  %v618_v0 = vmov 0.0   ;;  %v81_v1 = vld [vmem:[#allocation3] sm:$0xff]  ;;  %v82_v2 = vld [vmem:[#allocation3 + $0x8] sm:$0xff]  ;;  %vm64_vm0 = vcmask 203776  }
  0x26   :  { %48 = vst [vmem:[#allocation2] sm:$0xff] %v618_v0  ;;  %49 = vst [vmem:[#allocation2 + $0x8] sm:$0xff] %v618_v0  ;;  %v83_v3 = vld [vmem:[#allocation3 + $0x10] sm:$0xff]  ;;  %v497_v4 = vpack.c.bf16 %v82_v2, %v81_v1  ;;  %v84_v5 = vld [vmem:[#allocation3 + $0x18] sm:$0xff] }
  0x27   :  { %50 = vst [vmem:[#allocation2 + $0x10] sm:$0xff] %v618_v0  ;;  %51 = vst [vmem:[#allocation2 + $0x18] sm:$0xff] %v618_v0  ;;  %v501_v6 = vpack.c.bf16 %v84_v5, %v83_v3  ;;  %v85_v7 = vld [vmem:[#allocation3 + $0x20] sm:$0xff]  ;;  %v86_v8 = vld [vmem:[#allocation3 + $0x28] sm:$0xff] }
  0x28   :  { %52 = vst [vmem:[#allocation2 + $0x20] sm:$0xff] %v618_v0  ;;  %53 = vst [vmem:[#allocation2 + $0x28] sm:$0xff] %v618_v0  ;;  %498 = vmatprep.subr.bf16.mxu0 %v497_v4  ;;  %v87_v9 = vld [vmem:[#allocation3 + $0x30] sm:$0xff]  ;;  %v505_v10 = vpack.c.bf16 %v86_v8, %v85_v7  ;;  %v88_v11 = vld [vmem:[#allocation3 + $0x38] sm:$0xff] }
  0x29   :  { %54 = vst [vmem:[#allocation2 + $0x30] sm:$0xff] %v618_v0  ;;  %55 = vst [vmem:[#allocation2 + $0x38] sm:$0xff] %v618_v0  ;;  %500 = vmatpush3.bf16.msra.mxu0 %v497_v4  ;;  %v56_v12 = vld [vmem:[%s735_s0] sm:$0xff]  ;;  %v57_v13 = vld [vmem:[%s735_s0 + $0x8] sm:$0xff]  ;;  %v509_v23 = vpack.c.bf16 %v88_v11, %v87_v9 }
  0x2a   :  { %502 = vmatprep.subr.bf16.mxu0 %v501_v6  ;;  %65 = vst.msk [vmem:[#allocation2] sm:$0xff] %vm64_vm0, %v56_v12  ;;  %66 = vst.msk [vmem:[#allocation2 + $0x8] sm:$0xff] %vm64_vm0, %v57_v13  ;;  %v58_v14 = vld [vmem:[%s735_s0 + $0x10] sm:$0xff]  ;;  %v59_v15 = vld [vmem:[%s735_s0 + $0x18] sm:$0xff] }
  0x2b   :  { %v60_v16 = vld [vmem:[%s735_s0 + $0x20] sm:$0xff]  ;;  %67 = vst.msk [vmem:[#allocation2 + $0x10] sm:$0xff] %vm64_vm0, %v58_v14  ;;  %68 = vst.msk [vmem:[#allocation2 + $0x18] sm:$0xff] %vm64_vm0, %v59_v15  ;;  %v61_v17 = vld [vmem:[%s735_s0 + $0x28] sm:$0xff] }
  0x2c   :  { %69 = vst.msk [vmem:[#allocation2 + $0x20] sm:$0xff] %vm64_vm0, %v60_v16  ;;  %v62_v18 = vld [vmem:[%s735_s0 + $0x30] sm:$0xff]  ;;  %v63_v19 = vld [vmem:[%s735_s0 + $0x38] sm:$0xff]  ;;  %70 = vst.msk [vmem:[#allocation2 + $0x28] sm:$0xff] %vm64_vm0, %v61_v17 }
  0x2d   :  { %504 = vmatpush3.bf16.msra.mxu0 %v501_v6  ;;  %71 = vst.msk [vmem:[#allocation2 + $0x30] sm:$0xff] %vm64_vm0, %v62_v18  ;;  %72 = vst.msk [vmem:[#allocation2 + $0x38] sm:$0xff] %vm64_vm0, %v63_v19  ;;  %v217_v20 = vld [vmem:[#allocation5] sm:$0xff]  ;;  %v218_v21 = vld [vmem:[#allocation5 + $0x8] sm:$0xff] }
  0x2e   :  { %v219_v22 = vld [vmem:[#allocation5 + $0x10] sm:$0xff]  ;;  %506 = vmatprep.subr.bf16.mxu0 %v505_v10  ;;  %v89_v24 = vld [vmem:[#allocation3 + $0x40] sm:$0xff]  ;;  %v529_v25 = vpack.c.bf16 %v218_v21, %v217_v20  ;;  %v220_v26 = vld [vmem:[#allocation5 + $0x18] sm:$0xff] }
  0x2f   :  { %v90_v27 = vld [vmem:[#allocation3 + $0x48] sm:$0xff]  ;;  %v533_v28 = vpack.c.bf16 %v220_v26, %v219_v22  ;;  %v221_v29 = vld [vmem:[#allocation5 + $0x20] sm:$0xff]  ;;  %v91_v32 = vld [vmem:[#allocation3 + $0x50] sm:$0xff] }
  0x30   :  { %v222_v30 = vld [vmem:[#allocation5 + $0x28] sm:$0xff]  ;;  %530 = vmatprep.subr.bf16.mxu1 %v529_v25  ;;  %v513_v31 = vpack.c.bf16 %v90_v27, %v89_v24  ;;  %v92_v35 = vld [vmem:[#allocation3 + $0x58] sm:$0xff]  ;;  %v223_v36 = vld [vmem:[#allocation5 + $0x30] sm:$0xff] }
  0x31   :  { %508 = vmatpush3.bf16.msra.mxu0 %v505_v10  ;;  %532 = vmatpush3.bf16.msra.mxu1 %v529_v25  ;;  %v73_v33 = vld [vmem:[#allocation2] sm:$0xff]  ;;  %v537_v34 = vpack.c.bf16 %v222_v30, %v221_v29  ;;  %v224_v37 = vld [vmem:[#allocation5 + $0x38] sm:$0xff]  ;;  %v517_v38 = vpack.c.bf16 %v92_v35, %v91_v32  ;;  %v94_v41 = vld [vmem:[#allocation3 + $0x68] sm:$0xff] }
  0x32   :  { %510 = vmatprep.subr.bf16.mxu0 %v509_v23  ;;  %534 = vmatprep.subr.bf16.mxu1 %v533_v28  ;;  %v93_v39 = vld [vmem:[#allocation3 + $0x60] sm:$0xff]  ;;  %v541_v40 = vpack.c.bf16 %v224_v37, %v223_v36  ;;  %v226_v43 = vld [vmem:[#allocation5 + $0x48] sm:$0xff]  ;;  %v95_v45 = vld [vmem:[#allocation3 + $0x70] sm:$0xff] }
  0x33   :  { %441 = vmatprep.mubr.f32.mxu0 %v73_v33  ;;  %v225_v42 = vld [vmem:[#allocation5 + $0x40] sm:$0xff]  ;;  %v521_v44 = vpack.c.bf16 %v94_v41, %v93_v39  ;;  %v96_v47 = vld [vmem:[#allocation3 + $0x78] sm:$0xff]  ;;  %v227_v48 = vld [vmem:[#allocation5 + $0x50] sm:$0xff] }
  0x34   :  { %v545_v46 = vpack.c.bf16 %v226_v43, %v225_v42  ;;  %v228_v49 = vld [vmem:[#allocation5 + $0x58] sm:$0xff]  ;;  %v525_v50 = vpack.c.bf16 %v96_v47, %v95_v45  ;;  %v229_v52 = vld [vmem:[#allocation5 + $0x60] sm:$0xff]  ;;  %v230_v53 = vld [vmem:[#allocation5 + $0x68] sm:$0xff] }
  0x35   :  { %512 = vmatpush3.bf16.msra.mxu0 %v509_v23  ;;  %536 = vmatpush3.bf16.msra.mxu1 %v533_v28  ;;  %v549_v51 = vpack.c.bf16 %v228_v49, %v227_v48  ;;  %v553_v54 = vpack.c.bf16 %v230_v53, %v229_v52  ;;  %v74_v55 = vld [vmem:[#allocation2 + $0x8] sm:$0xff]  ;;  %v75_v56 = vld [vmem:[#allocation2 + $0x10] sm:$0xff]  ;;  %v76_v57 = vld [vmem:[#allocation2 + $0x18] sm:$0xff] }
  0x36   :  { %514 = vmatprep.subr.bf16.mxu0 %v513_v31  ;;  %538 = vmatprep.subr.bf16.mxu1 %v537_v34  ;;  %v77_v58 = vld [vmem:[#allocation2 + $0x20] sm:$0xff]  ;;  %v78_v59 = vld [vmem:[#allocation2 + $0x28] sm:$0xff]  ;;  %v79_v60 = vld [vmem:[#allocation2 + $0x30] sm:$0xff] }
  0x37   :  { %v80_v61 = vld [vmem:[#allocation2 + $0x38] sm:$0xff]  ;;  %v231_v62 = vld [vmem:[#allocation5 + $0x70] sm:$0xff]  ;;  %v359_v1 = vld [vmem:[%s737_s2] ss:$0 sm:$0xff] }
  0x38   :  { %v232_v63 = vld [vmem:[#allocation5 + $0x78] sm:$0xff]  ;;  %v360_v26 = vld [vmem:[%s739_s4] ss:$0 sm:$0xff] }
  0x39   :  { %516 = vmatpush3.bf16.msra.mxu0 %v513_v31  ;;  %540 = vmatpush3.bf16.msra.mxu1 %v537_v34  ;;  %v557_v0 = vpack.c.bf16 %v232_v63, %v231_v62 }
  0x3a   :  { %518 = vmatprep.subr.bf16.mxu0 %v517_v38  ;;  %542 = vmatprep.subr.bf16.mxu1 %v541_v40 }
  0x3d   :  { %520 = vmatpush3.bf16.msra.mxu0 %v517_v38  ;;  %544 = vmatpush3.bf16.msra.mxu1 %v541_v40 }
  0x3e   :  { %522 = vmatprep.subr.bf16.mxu0 %v521_v44  ;;  %546 = vmatprep.subr.bf16.mxu1 %v545_v46 }
  0x41   :  { %524 = vmatpush3.bf16.msra.mxu0 %v521_v44  ;;  %548 = vmatpush3.bf16.msra.mxu1 %v545_v46 }
  0x42   :  { %526 = vmatprep.subr.bf16.mxu0 %v525_v50  ;;  %550 = vmatprep.subr.bf16.mxu1 %v549_v51 }
  0x45   :  { %528 = vmatpush3.bf16.msra.mxu0 %v525_v50  ;;  %552 = vmatpush3.bf16.msra.mxu1 %v549_v51 }
  0x46   :  { %554 = vmatprep.subr.bf16.mxu1 %v553_v54 }
  0x48   :  { %442 = vmatmul.mubr.f32.vlgmr.msra.gmra.mrb[0].mxu0 %v74_v55 }
  0x49   :  { %444 = vmatprep.mubr.f32.mxu0 %v75_v56  ;;  %556 = vmatpush3.bf16.msra.mxu1 %v553_v54 }
  0x4a   :  { %558 = vmatprep.subr.bf16.mxu1 %v557_v0 }
  0x4c   :  { %445 = vmatmul.mubr.f32.gmra.mrb[2].mxu0 %v76_v57 }
  0x4d   :  { %447 = vmatprep.mubr.f32.mxu0 %v77_v58  ;;  %560 = vmatpush3.bf16.msra.mxu1 %v557_v0 }
  0x50   :  { %448 = vmatmul.mubr.f32.gmra.mrb[4].mxu0 %v78_v59 }
  0x51   :  { %450 = vmatprep.mubr.f32.mxu0 %v79_v60 }
  0x54   :  { %451 = vmatmul.mubr.f32.gmra.mrb[6].mxu0 %v80_v61 }
 0x11b   :  { %v443_v2 = vpop.f32.mrb[0].mxu0 }
 0x11c   :  { %v176_v3 = vadd.f32 %v443_v2, %v359_v1  ;;  %v170_v4 = vpop.f32.mrb[1].mxu0 }
 0x11d   :  { %v171_v5 = vadd.f32 %v359_v1, %v170_v4 }
 0x11e   :  { %v210_v8 = vmax.f32 %v176_v3, 0.0 }
 0x11f   :  { %v446_v6 = vpop.f32.mrb[2].mxu0  ;;  %v209_v7 = vmax.f32 %v171_v5, 0.0 }
 0x120   :  { %v186_v9 = vadd.f32 %v446_v6, %v359_v1  ;;  %v180_v10 = vpop.f32.mrb[3].mxu0 }
 0x121   :  { %v181_v11 = vadd.f32 %v359_v1, %v180_v10  ;;  %485 = vmatprep.mubr.f32.mxu1 %v209_v7 }
 0x122   :  { %486 = vmatmul.mubr.f32.vlgmr.msra.gmra.mrb[0].mxu1 %v210_v8  ;;  %v212_v14 = vmax.f32 %v186_v9, 0.0 }
 0x123   :  { %v211_v12 = vmax.f32 %v181_v11, 0.0  ;;  %v449_v13 = vpop.f32.mrb[4].mxu0 }
 0x124   :  { %v196_v15 = vadd.f32 %v449_v13, %v359_v1  ;;  %v190_v16 = vpop.f32.mrb[5].mxu0 }
 0x125   :  { %v191_v17 = vadd.f32 %v359_v1, %v190_v16  ;;  %488 = vmatprep.mubr.f32.mxu1 %v211_v12 }
 0x126   :  { %489 = vmatmul.mubr.f32.gmra.mrb[2].mxu1 %v212_v14  ;;  %v214_v20 = vmax.f32 %v196_v15, 0.0 }
 0x127   :  { %v213_v18 = vmax.f32 %v191_v17, 0.0  ;;  %v452_v19 = vpop.f32.mrb[6].mxu0 }
 0x128   :  { %v206_v21 = vadd.f32 %v452_v19, %v359_v1  ;;  %v200_v22 = vpop.f32.mrb[7].mxu0 }
 0x129   :  { %v201_v23 = vadd.f32 %v359_v1, %v200_v22  ;;  %491 = vmatprep.mubr.f32.mxu1 %v213_v18 }
 0x12a   :  { %492 = vmatmul.mubr.f32.gmra.mrb[4].mxu1 %v214_v20  ;;  %v216_v25 = vmax.f32 %v206_v21, 0.0 }
 0x12b   :  { %v215_v24 = vmax.f32 %v201_v23, 0.0 }
 0x12d   :  { %494 = vmatprep.mubr.f32.mxu1 %v215_v24 }
 0x12e   :  { %495 = vmatmul.mubr.f32.gmra.mrb[6].mxu1 %v216_v25 }
 0x1f5   :  { %v487_v27 = vpop.f32.mrb[0].mxu1 }
 0x1f6   :  { %v312_v28 = vadd.f32 %v487_v27, %v360_v26  ;;  %v306_v29 = vpop.f32.mrb[1].mxu1 }
 0x1f7   :  { %v307_v30 = vadd.f32 %v360_v26, %v306_v29 }
 0x1f8   :  { %346 = vst [vmem:[%s740_s5 + $0x8] sm:$0xff] %v312_v28 }
 0x1f9   :  { %345 = vst [vmem:[%s740_s5] sm:$0xff] %v307_v30  ;;  %v490_v31 = vpop.f32.mrb[2].mxu1 }
 0x1fa   :  { %v322_v32 = vadd.f32 %v490_v31, %v360_v26  ;;  %v316_v33 = vpop.f32.mrb[3].mxu1 }
 0x1fb   :  { %v317_v34 = vadd.f32 %v360_v26, %v316_v33 }
 0x1fc   :  { %348 = vst [vmem:[%s740_s5 + $0x18] sm:$0xff] %v322_v32 }
 0x1fd   :  { %347 = vst [vmem:[%s740_s5 + $0x10] sm:$0xff] %v317_v34  ;;  %v493_v35 = vpop.f32.mrb[4].mxu1 }
 0x1fe   :  { %v332_v36 = vadd.f32 %v493_v35, %v360_v26  ;;  %v326_v37 = vpop.f32.mrb[5].mxu1 }
 0x1ff   :  { %v327_v38 = vadd.f32 %v360_v26, %v326_v37 }
 0x200   :  { %350 = vst [vmem:[%s740_s5 + $0x28] sm:$0xff] %v332_v36 }
 0x201   :  { %349 = vst [vmem:[%s740_s5 + $0x20] sm:$0xff] %v327_v38  ;;  %v496_v39 = vpop.f32.mrb[6].mxu1 }
 0x202   :  { %v342_v40 = vadd.f32 %v496_v39, %v360_v26  ;;  %v336_v41 = vpop.f32.mrb[7].mxu1 }
 0x203   :  { %v337_v42 = vadd.f32 %v360_v26, %v336_v41 }
 0x204   :  { %352 = vst [vmem:[%s740_s5 + $0x38] sm:$0xff] %v342_v40 }
 0x205   :  { %351 = vst [vmem:[%s740_s5 + $0x30] sm:$0xff] %v337_v42 }
 0x206   :  { %357 = vsyncpa [#allocation4], 1 }
 0x207   :  { %358 = vsyncpa [#allocation6], 1 }

</bundles_post_ra>
